<compile_context>
chip_gen: v7x
topology: tpu7x:2x2x1
jax: 0.10.0
libtpu: 0.0.40
codegen_flags: <defaults>
</compile_context>

<pallas_src>
import functools

import jax
import jax.numpy as jnp
from jax.experimental import pallas as pl
from jax.experimental.pallas import tpu as pltpu

BN_EPS = 1e-5
LANE = 128


def _round_up(v, m):
    return (v + m - 1) // m * m


def _fclayer_kernel(x_ref, w_ref, p_ref, o_ref, *, residual: bool, use_bn: bool):
    # x_ref: (N, Kin_p)  resident across the feature grid
    # w_ref: (Kin_p, tk) feature tile of the (pre-transposed) weight
    # p_ref: (3, tk)     rows = [bias, gamma, beta]
    # o_ref: (N, tk)
    x = x_ref[...]                                       # (N, Kin_p) f32
    params = p_ref[...]                                  # (3, tk)    f32
    bias = params[0:1, :]

    # --- Linear: y = x @ W + b  (MXU, f32 accumulate) ---
    y = jnp.dot(x, w_ref[...], preferred_element_type=jnp.float32) + bias

    # --- BatchNorm1d (training mode: batch mean / biased var over rows) ---
    if use_bn:
        gamma = params[1:2, :]
        beta = params[2:3, :]
        inv_n = 1.0 / y.shape[0]
        mean = jnp.sum(y, axis=0, keepdims=True) * inv_n           # (1, tk)
        centered = y - mean
        var = jnp.sum(centered * centered, axis=0, keepdims=True) * inv_n
        # Fold the affine into per-feature scale/shift (cheap (1,tk) math),
        # leaving only 2 full-size (N,tk) VALU ops below.
        scale = jax.lax.rsqrt(var + BN_EPS) * gamma                # EUP rsqrt
        shift = beta - mean * scale
        y = y * scale + shift

    # --- ReLU ---
    y = jnp.maximum(y, 0.0)

    # --- residual (only when k_out == k_in; padded columns of x are zero) ---
    if residual:
        tk = o_ref.shape[-1]
        col0 = pl.multiple_of(pl.program_id(0) * tk, LANE)
        y = y + x_ref[:, pl.ds(col0, tk)]

    o_ref[...] = y.astype(o_ref.dtype)


def fclayer_forward(x, w, b, gamma, beta, *, use_bn=True, tk=LANE):
    """FCLayer forward.

    x: (..., k_in); w: (k_in, k_out) (pre-transposed vs. torch nn.Linear);
    b/gamma/beta: (k_out,).
    """
    k_in = x.shape[-1]
    k_out = w.shape[-1]
    residual = (k_in == k_out)

    lead = x.shape[:-1]
    n = 1
    for s in lead:
        n *= s

    # Lane-dense feature padding (multiple of 128).  N stays un-padded so BN
    # statistics are exact; the (N, ...) block equals the full array extent.
    kin_p = max(_round_up(k_in, LANE), LANE)
    kout_p = max(_round_up(k_out, LANE), LANE)
    tk = min(tk, kout_p)
    assert kout_p % tk == 0 and tk % LANE == 0

    x2 = jnp.pad(x.reshape(n, k_in).astype(jnp.float32),
                 ((0, 0), (0, kin_p - k_in)))
    w2 = jnp.pad(w.astype(jnp.float32),
                 ((0, kin_p - k_in), (0, kout_p - k_out)))
    # Single fused per-feature parameter block: rows = [bias, gamma, beta].
    params = jnp.stack([
        jnp.pad(b.astype(jnp.float32), (0, kout_p - k_out)),
        jnp.pad(gamma.astype(jnp.float32), (0, kout_p - k_out)),
        jnp.pad(beta.astype(jnp.float32), (0, kout_p - k_out)),
    ], axis=0)                                            # (3, kout_p)

    kernel = functools.partial(_fclayer_kernel, residual=residual, use_bn=use_bn)

    out = pl.pallas_call(
        kernel,
        out_shape=jax.ShapeDtypeStruct((n, kout_p), jnp.float32),
        grid_spec=pl.GridSpec(
            grid=(kout_p // tk,),
            in_specs=[
                # x is resident across all feature tiles (constant block index).
                pl.BlockSpec((n, kin_p), lambda j: (0, 0)),
                pl.BlockSpec((kin_p, tk), lambda j: (0, j)),
                pl.BlockSpec((3, tk), lambda j: (0, j)),
            ],
            out_specs=pl.BlockSpec((n, tk), lambda j: (0, j)),
        ),
        compiler_params=pltpu.CompilerParams(
            # Feature tiles are independent (each sees the full N rows, so BN
            # stays exact) -> shard across the 2 TensorCores on v7x.
            dimension_semantics=("parallel",),
        ),
    )(x2, w2, params)

    return out[:, :k_out].reshape(*lead, k_out)


def _reference(x, w, b, gamma, beta, *, use_bn=True):
    k_in = x.shape[-1]
    k_out = w.shape[-1]
    lead = x.shape[:-1]
    x2 = x.reshape(-1, k_in)
    y = x2 @ w + b[None, :]
    if use_bn:
        mean = jnp.mean(y, axis=0, keepdims=True)
        var = jnp.mean((y - mean) ** 2, axis=0, keepdims=True)
        y = (y - mean) / jnp.sqrt(var + BN_EPS) * gamma[None, :] + beta[None, :]
    y = jnp.maximum(y, 0.0)
    if k_in == k_out:
        y = y + x2
    return y.reshape(*lead, k_out)


if __name__ == "__main__":
    # Module config: k_in = k_out = 32  -> residual=True, use_bn=True
    B, S, K_IN = 2, 8, 32
    K_OUT = K_IN

    key = jax.random.PRNGKey(0)
    kx, kw, kb = jax.random.split(key, 3)

    x = jax.random.normal(kx, (B, S, K_IN), dtype=jnp.float32)

    # PyTorch nn.Linear-style init: U(-1/sqrt(k_in), 1/sqrt(k_in))
    bound = 1.0 / (K_IN ** 0.5)
    w = jax.random.uniform(kw, (K_IN, K_OUT), minval=-bound, maxval=bound,
                           dtype=jnp.float32)            # stored (K_in, K_out)
    b = jax.random.uniform(kb, (K_OUT,), minval=-bound, maxval=bound,
                           dtype=jnp.float32)
    gamma = jnp.ones((K_OUT,), jnp.float32)              # BatchNorm1d default weight
    beta = jnp.zeros((K_OUT,), jnp.float32)              # BatchNorm1d default bias

    out = fclayer_forward(x, w, b, gamma, beta, use_bn=True)
    out = jax.block_until_ready(out)

    ref = _reference(x, w, b, gamma, beta, use_bn=True)
    assert out.shape == (B, S, K_OUT)
    assert jnp.allclose(out, ref, atol=1e-4, rtol=1e-4), "mismatch vs reference"

    print("KERNEL_OK")
</pallas_src>

<mosaic_0001>
module attributes {stable_mosaic.version = 11 : i64} {
  func.func @_fclayer_kernel(%arg0: i32, %arg1: memref<16x128xf32, #tpu.memory_space<vmem>>, %arg2: memref<128x128xf32, #tpu.memory_space<vmem>>, %arg3: memref<3x128xf32, #tpu.memory_space<vmem>>, %arg4: memref<16x128xf32, #tpu.memory_space<vmem>>) attributes {dimension_semantics = [#tpu.dimension_semantics<parallel>], iteration_bounds = array<i64: 1>, scalar_prefetch = 0 : i64, scratch_operands = 0 : i64, tpu.core_type = #tpu.core_type<tc>, window_params = [{pipeline_mode = #tpu.pipeline_mode<synchronous>, transform_indices = @transform_0, window_bounds = array<i64: 16, 128>}, {transform_indices = @transform_1, window_bounds = array<i64: 128, 128>}, {transform_indices = @transform_2, window_bounds = array<i64: 3, 128>}, {transform_indices = @transform_3, window_bounds = array<i64: 16, 128>}]} {
    %c0 = arith.constant 0 : index
    %c0_0 = arith.constant 0 : index
    %0 = vector.load %arg1[%c0, %c0_0] : memref<16x128xf32, #tpu.memory_space<vmem>>, vector<16x128xf32>
    %c0_1 = arith.constant 0 : index
    %c0_2 = arith.constant 0 : index
    %1 = vector.load %arg3[%c0_1, %c0_2] : memref<3x128xf32, #tpu.memory_space<vmem>>, vector<3x128xf32>
    %2 = vector.extract_strided_slice %1 {offsets = [0, 0], sizes = [1, 128], strides = [1, 1]} : vector<3x128xf32> to vector<1x128xf32>
    %c0_3 = arith.constant 0 : index
    %c0_4 = arith.constant 0 : index
    %3 = vector.load %arg2[%c0_3, %c0_4] : memref<128x128xf32, #tpu.memory_space<vmem>>, vector<128x128xf32>
    %cst = arith.constant dense<0.000000e+00> : vector<16x128xf32>
    %4 = tpu.matmul %0, %3, %cst {dimension_numbers = #tpu.dot_dimension_numbers<[1], [0], [0], [1], [0, 0, 1, 1], [], []>} : vector<16x128xf32>, vector<128x128xf32>, vector<16x128xf32> -> vector<16x128xf32>
    %5 = vector.broadcast %2 : vector<1x128xf32> to vector<16x128xf32>
    %6 = arith.addf %4, %5 : vector<16x128xf32>
    %7 = vector.extract_strided_slice %1 {offsets = [1, 0], sizes = [1, 128], strides = [1, 1]} : vector<3x128xf32> to vector<1x128xf32>
    %8 = vector.extract_strided_slice %1 {offsets = [2, 0], sizes = [1, 128], strides = [1, 1]} : vector<3x128xf32> to vector<1x128xf32>
    %cst_5 = arith.constant dense<0.000000e+00> : vector<128xf32>
    %9 = vector.multi_reduction <add>, %6, %cst_5 [0] : vector<16x128xf32> to vector<128xf32>
    %10 = vector.shape_cast %9 : vector<128xf32> to vector<1x128xf32>
    %cst_6 = arith.constant 6.250000e-02 : f32
    %11 = vector.broadcast %cst_6 : f32 to vector<1x128xf32>
    %12 = arith.mulf %10, %11 : vector<1x128xf32>
    %13 = vector.broadcast %12 : vector<1x128xf32> to vector<16x128xf32>
    %14 = arith.subf %6, %13 : vector<16x128xf32>
    %15 = arith.mulf %14, %14 : vector<16x128xf32>
    %cst_7 = arith.constant dense<0.000000e+00> : vector<128xf32>
    %16 = vector.multi_reduction <add>, %15, %cst_7 [0] : vector<16x128xf32> to vector<128xf32>
    %17 = vector.shape_cast %16 : vector<128xf32> to vector<1x128xf32>
    %cst_8 = arith.constant 6.250000e-02 : f32
    %18 = vector.broadcast %cst_8 : f32 to vector<1x128xf32>
    %19 = arith.mulf %17, %18 : vector<1x128xf32>
    %cst_9 = arith.constant 9.99999974E-6 : f32
    %20 = vector.broadcast %cst_9 : f32 to vector<1x128xf32>
    %21 = arith.addf %19, %20 : vector<1x128xf32>
    %22 = math.rsqrt %21 : vector<1x128xf32>
    %23 = arith.mulf %22, %7 : vector<1x128xf32>
    %24 = arith.mulf %12, %23 : vector<1x128xf32>
    %25 = arith.subf %8, %24 : vector<1x128xf32>
    %26 = vector.broadcast %23 : vector<1x128xf32> to vector<16x128xf32>
    %27 = arith.mulf %6, %26 : vector<16x128xf32>
    %28 = vector.broadcast %25 : vector<1x128xf32> to vector<16x128xf32>
    %29 = arith.addf %27, %28 : vector<16x128xf32>
    %cst_10 = arith.constant 0.000000e+00 : f32
    %30 = vector.broadcast %cst_10 : f32 to vector<16x128xf32>
    %31 = arith.maximumf %29, %30 : vector<16x128xf32>
    %c128_i32 = arith.constant 128 : i32
    %32 = arith.muli %arg0, %c128_i32 : i32
    %33 = tpu.assume_multiple %32, 128 : i32
    %c0_11 = arith.constant 0 : index
    %34 = arith.index_cast %33 : i32 to index
    %35 = vector.load %arg1[%c0_11, %34] : memref<16x128xf32, #tpu.memory_space<vmem>>, vector<16x128xf32>
    %36 = arith.addf %31, %35 : vector<16x128xf32>
    %c0_12 = arith.constant 0 : index
    %c0_13 = arith.constant 0 : index
    %37 = vector.load %arg4[%c0_12, %c0_13] : memref<16x128xf32, #tpu.memory_space<vmem>>, vector<16x128xf32>
    tpu.vector_store %arg4[%c0_12, %c0_13], %36 {strides = array<i32>} : memref<16x128xf32, #tpu.memory_space<vmem>>, vector<16x128xf32>,
    return
  }
  func.func @transform_0(%arg0: i32) -> (i32, i32) {
    %c0_i32 = arith.constant 0 : i32
    %c0_i32_0 = arith.constant 0 : i32
    %c0_i32_1 = arith.constant 0 : i32
    return %c0_i32, %c0_i32_0 : i32, i32
  }
  func.func @transform_1(%arg0: i32) -> (i32, i32) {
    %c0_i32 = arith.constant 0 : i32
    %c0_i32_0 = arith.constant 0 : i32
    return %c0_i32, %arg0 : i32, i32
  }
  func.func @transform_2(%arg0: i32) -> (i32, i32) {
    %c0_i32 = arith.constant 0 : i32
    %c0_i32_0 = arith.constant 0 : i32
    return %c0_i32, %arg0 : i32, i32
  }
  func.func @transform_3(%arg0: i32) -> (i32, i32) {
    %c0_i32 = arith.constant 0 : i32
    %c0_i32_0 = arith.constant 0 : i32
    return %c0_i32, %arg0 : i32, i32
  }
}

</mosaic_0001>

<bundles_post_ra>
// kernel: tpu_custom_call.1
= control target key start
LH: loop header
LB: loop body
LE: loop exit
PB: predicated region body
PF: predicated region fallthrough
CT: control target
= control target key end

     0   :  { %8 = vsyncpa [#allocation3], 0  ;;  %s453_s0 = inlined_call_operand.hbm [shape: f32[16,128], index: 0, kind: input, shape index: {}]   ;;  %s454_s1 = inlined_call_operand.hbm [shape: f32[128,128], index: 1, kind: input, shape index: {}]   ;;  %s455_s2 = inlined_call_operand.vmem [shape: f32[3,128], index: 2, kind: input, shape index: {}]   ;;  %s456_s3 = inlined_call_operand.hbm [shape: f32[16,128], index: 3, kind: output, shape index: {}]  }
   0x1   :  { %9 = vsyncpa [#allocation6], 0 }
   0x2   :  { %10 = vsyncpa [#allocation4], 0  ;;  %s376_s12 = smov [#allocation2]   ;;  %s304_s16 = scalar_lea.hbm %s453_s0, 256 }
   0x3   :  { %s16_s13 = sshll.u32 %s376_s12, 4  ;;  %p305_p0 = scmp.ne.s32.totalorder %s453_s0, %s304_s16  ;;  %s17_s13 = int_to_ptr.vmem [resolvable:$true] %s16_s13 }
   0x4   :  { %p308_p1 = scmp.lt.u32.totalorder %s304_s16, %s453_s0 }
   0x6   :  { %p310_p2 = pnand %p308_p1, %p305_p0 }
   0x8   :  { %313 = shalt.err (!%p310_p2)
}
   0x9   :  { %s314_s21 = scalar_lea.vmem %s17_s13, 256  ;;  %p319_p4 = scmp.lt.s32.totalorder %s17_s13, %s17_s13 }
   0xa   :  { %p315_p3 = scmp.ne.s32.totalorder %s17_s13, %s314_s21  ;;  %p320_p5 = scmp.lt.s32.totalorder %s314_s21, %s314_s21 }
   0xc   :  { %p321_p6 = por %p320_p5, %p319_p4 }
   0xe   :  { %p322_p7 = pnand %p321_p6, %p315_p3 }
  0x10   :  { %325 = shalt.err (!%p322_p7)
}
  0x11   :  { %s377_s22 = smov 128   ;;  %s378_s23 = smov 8  }
  0x12   :  { %22 = dma.hbm_to_vmem [thread:$0]  %s453_s0, 256, %s17_s13, [#allocation3], %s377_s22, %s377_s22, %s378_s23  }
  0x13   :  { %s379_s26 = smov [#allocation5]   ;;  %s326_s30 = scalar_lea.hbm %s454_s1, 2048 }
  0x14   :  { %s28_s27 = sshll.u32 %s379_s26, 4  ;;  %p327_p8 = scmp.ne.s32.totalorder %s454_s1, %s326_s30  ;;  %s29_s27 = int_to_ptr.vmem [resolvable:$true] %s28_s27 }
  0x15   :  { %p330_p9 = scmp.lt.u32.totalorder %s326_s30, %s454_s1 }
  0x17   :  { %p332_p10 = pnand %p330_p9, %p327_p8 }
  0x19   :  { %335 = shalt.err (!%p332_p10)
}
  0x1a   :  { %s336_s8 = scalar_lea.vmem %s29_s27, 2048  ;;  %p341_p12 = scmp.lt.s32.totalorder %s29_s27, %s29_s27 }
  0x1b   :  { %p337_p11 = scmp.ne.s32.totalorder %s29_s27, %s336_s8  ;;  %p342_p13 = scmp.lt.s32.totalorder %s336_s8, %s336_s8 }
  0x1d   :  { %p343_p0 = por %p342_p13, %p341_p12 }
  0x1f   :  { %p344_p1 = pnand %p343_p0, %p337_p11 }
  0x21   :  { %347 = shalt.err (!%p344_p1)
}
  0x22   :  { %34 = dma.hbm_to_vmem [thread:$0]  %s454_s1, 2048, %s29_s27, [#allocation6], %s377_s22, %s377_s22, %s378_s23  }
  0x23   :  { %370 = dma.done.wait [#allocation3], 256  }
  0x24   :  { %371 = vsyncadd [#allocation3], 4294967040 }
  0x25   :  { %372 = dma.done.wait [#allocation6], 2048  }
  0x26   :  { %373 = vsyncadd [#allocation6], 4294965248  ;;  %v46_v0 = vld [vmem:[#allocation5] sm:$0xff]  ;;  %v47_v1 = vld [vmem:[#allocation5 + $0x8] sm:$0xff]  ;;  %v62_v26 = vlaneseq }
  0x27   :  { %v48_v2 = vld [vmem:[#allocation5 + $0x10] sm:$0xff]  ;;  %v265_v3 = vpack.c.bf16 %v47_v1, %v46_v0  ;;  %v49_v4 = vld [vmem:[#allocation5 + $0x18] sm:$0xff]  ;;  %v50_v6 = vld [vmem:[#allocation5 + $0x20] sm:$0xff] }
  0x28   :  { %v269_v5 = vpack.c.bf16 %v49_v4, %v48_v2  ;;  %v51_v7 = vld [vmem:[#allocation5 + $0x28] sm:$0xff]  ;;  %v431_v9 = vld [vmem:[#allocation2] sm:$0xff]  ;;  %v53_v11 = vld [vmem:[#allocation5 + $0x38] sm:$0xff]  ;;  %v63_v27 = vshrl.u32 %v62_v26, 7 }
  0x29   :  { %266 = vmatprep.subr.bf16.mxu0 %v265_v3  ;;  %v273_v8 = vpack.c.bf16 %v51_v7, %v50_v6  ;;  %v52_v10 = vld [vmem:[#allocation5 + $0x30] sm:$0xff]  ;;  %262 = vmatprep.mubr.f32.mxu0 %v431_v9  ;;  %v54_v13 = vld [vmem:[#allocation5 + $0x40] sm:$0xff]  ;;  %v55_v14 = vld [vmem:[#allocation5 + $0x48] sm:$0xff] }
  0x2a   :  { %268 = vmatpush3.bf16.msra.mxu0 %v265_v3  ;;  %v277_v12 = vpack.c.bf16 %v53_v11, %v52_v10  ;;  %v281_v15 = vpack.c.bf16 %v55_v14, %v54_v13  ;;  %v56_v16 = vld [vmem:[#allocation5 + $0x50] sm:$0xff]  ;;  %v57_v17 = vld [vmem:[#allocation5 + $0x58] sm:$0xff]  ;;  %v58_v19 = vld [vmem:[#allocation5 + $0x60] sm:$0xff]  ;;  %v64_v28 = vsub.s32 0, %v63_v27  ;;  %v171_v56 = vsub.s32 1, %v63_v27 }
  0x2b   :  { %270 = vmatprep.subr.bf16.mxu0 %v269_v5  ;;  %v285_v18 = vpack.c.bf16 %v57_v17, %v56_v16  ;;  %v59_v20 = vld [vmem:[#allocation5 + $0x68] sm:$0xff]  ;;  %v60_v22 = vld [vmem:[#allocation5 + $0x70] sm:$0xff]  ;;  %v61_v23 = vld [vmem:[#allocation5 + $0x78] sm:$0xff]  ;;  %v177_v0 = vsub.s32 2, %v63_v27 }
  0x2c   :  { %v289_v21 = vpack.c.bf16 %v59_v20, %v58_v19  ;;  %v293_v24 = vpack.c.bf16 %v61_v23, %v60_v22  ;;  %v44_v25 = vld [vmem:[#allocation2 + $0x8] sm:$0xff]  ;;  %v45_v29 = vld [vmem:[%s455_s2] sm:$0x7]  ;;  %s380_s2 = smov [#allocation7]  }
  0x2d   :  { %v65_v30 = vrot.slane %v45_v29, %v64_v28  ;;  %s198_s11 = sshll.u32 %s380_s2, 4  ;;  %s199_s11 = int_to_ptr.vmem [resolvable:$true] %s198_s11 }
  0x2e   :  { %272 = vmatpush3.bf16.msra.mxu0 %v269_v5  ;;  %s348_s12 = scalar_lea.vmem %s199_s11, 256  ;;  %p353_p3 = scmp.lt.s32.totalorder %s199_s11, %s199_s11 }
  0x2f   :  { %274 = vmatprep.subr.bf16.mxu0 %v273_v8  ;;  %p349_p2 = scmp.ne.s32.totalorder %s199_s11, %s348_s12  ;;  %p354_p4 = scmp.lt.s32.totalorder %s348_s12, %s348_s12 }
  0x31   :  { %p355_p5 = por %p354_p4, %p353_p3 }
  0x32   :  { %276 = vmatpush3.bf16.msra.mxu0 %v273_v8 }
  0x33   :  { %278 = vmatprep.subr.bf16.mxu0 %v277_v12  ;;  %p356_p6 = pnand %p355_p5, %p349_p2 }
  0x36   :  { %280 = vmatpush3.bf16.msra.mxu0 %v277_v12 }
  0x37   :  { %282 = vmatprep.subr.bf16.mxu0 %v281_v15 }
  0x3a   :  { %284 = vmatpush3.bf16.msra.mxu0 %v281_v15 }
  0x3b   :  { %286 = vmatprep.subr.bf16.mxu0 %v285_v18 }
  0x3e   :  { %288 = vmatpush3.bf16.msra.mxu0 %v285_v18 }
  0x3f   :  { %290 = vmatprep.subr.bf16.mxu0 %v289_v21 }
  0x42   :  { %292 = vmatpush3.bf16.msra.mxu0 %v289_v21 }
  0x43   :  { %294 = vmatprep.subr.bf16.mxu0 %v293_v24 }
  0x46   :  { %296 = vmatpush3.bf16.msra.mxu0 %v293_v24 }
  0x49   :  { %263 = vmatmul.mubr.f32.vlgmr.msra.gmra.mrb[0].mxu0 %v44_v25 }
 0x11c   :  { %v264_v31 = vpop.f32.mrb[0].mxu0 }
 0x11d   :  { %v138_v32 = vadd.f32 %v264_v31, %v65_v30  ;;  %v132_v33 = vpop.f32.mrb[1].mxu0 }
 0x11e   :  { %v133_v34 = vadd.f32 %v132_v33, %v65_v30 }
 0x120   :  { %v141_v35 = vadd.f32 %v138_v32, %v133_v34 }
 0x122   :  { %v142_v36 = vrot.slane %v141_v35, 4 }
 0x124   :  { %v143_v37 = vadd.f32 %v142_v36, %v141_v35 }
 0x126   :  { %v144_v38 = vrot.slane %v143_v37, 2 }
 0x128   :  { %v145_v39 = vadd.f32 %v144_v38, %v143_v37 }
 0x12a   :  { %v146_v40 = vrot.slane %v145_v39, 1 }
 0x12c   :  { %v147_v41 = vadd.f32 %v146_v40, %v145_v39 }
 0x12e   :  { %v148_v42 = vmul.f32 0.0625, %v147_v41 }
 0x130   :  { %v149_v43 = vsub.f32 %v133_v34, %v148_v42  ;;  %v150_v44 = vsub.f32 %v138_v32, %v148_v42 }
 0x132   :  { %v151_v45 = vmul.f32 %v149_v43, %v149_v43  ;;  %v152_v46 = vmul.f32 %v150_v44, %v150_v44 }
 0x134   :  { %v153_v47 = vadd.f32 %v152_v46, %v151_v45 }
 0x136   :  { %v154_v48 = vrot.slane %v153_v47, 4 }
 0x138   :  { %v155_v49 = vadd.f32 %v154_v48, %v153_v47 }
 0x13a   :  { %v156_v50 = vrot.slane %v155_v49, 2 }
 0x13c   :  { %v157_v51 = vadd.f32 %v156_v50, %v155_v49 }
 0x13e   :  { %v158_v52 = vrot.slane %v157_v51, 1 }
 0x140   :  { %v159_v53 = vadd.f32 %v158_v52, %v157_v51 }
 0x142   :  { %v160_v54 = vmul.f32 0.0625, %v159_v53 }
 0x144   :  { %v161_v55 = vadd.f32 1e-05, %v160_v54 }
 0x146   :  { %302 = vrsqrt.f32 %v161_v55 }
 0x150   :  { %v303_v57 = vpop.eup %302 }
 0x151   :  { %v163_v58 = vmul.f32 %v303_v57, %v45_v29 }
 0x153   :  { %v164_v59 = vmul.f32 %v163_v58, %v148_v42  ;;  %v172_v60 = vrot.slane %v163_v58, %v171_v56 }
 0x155   :  { %v166_v61 = vrot.slane %v164_v59, 7  ;;  %v173_v62 = vmul.f32 %v172_v60, %v133_v34  ;;  %v174_v63 = vmul.f32 %v172_v60, %v138_v32 }
 0x157   :  { %v168_v1 = vsub.f32 %v45_v29, %v166_v61 }
 0x159   :  { %v178_v2 = vrot.slane %v168_v1, %v177_v0 }
 0x15b   :  { %v179_v3 = vadd.f32 %v178_v2, %v173_v62  ;;  %v180_v4 = vadd.f32 %v178_v2, %v174_v63 }
 0x15d   :  { %v181_v5 = vmax.f32 %v179_v3, 0.0  ;;  %v182_v6 = vmax.f32 %v180_v4, 0.0 }
 0x15f   :  { %v189_v7 = vadd.f32 %v181_v5, %v431_v9  ;;  %v190_v8 = vadd.f32 %v182_v6, %v44_v25 }
 0x161   :  { %191 = vst [vmem:[#allocation7] sm:$0xff] %v189_v7  ;;  %192 = vst [vmem:[#allocation7 + $0x8] sm:$0xff] %v190_v8 }
 0x162   :  { %359 = shalt.err (!%p356_p6)
}
 0x163   :  { %s360_s15 = scalar_lea.hbm %s456_s3, 256 }
 0x164   :  { %p361_p7 = scmp.ne.s32.totalorder %s456_s3, %s360_s15  ;;  %p364_p8 = scmp.lt.u32.totalorder %s360_s15, %s456_s3 }
 0x166   :  { %p366_p9 = pnand %p364_p8, %p361_p7 }
 0x168   :  { %369 = shalt.err (!%p366_p9)
}
 0x169   :  { %204 = dma.vmem_to_hbm [thread:$0]  %s199_s11, 256, %s456_s3, [#allocation4], %s377_s22, %s377_s22, %s378_s23  }
 0x16a   :  { %374 = dma.done.wait [#allocation4], 256  }
 0x16b   :  { %375 = vsyncadd [#allocation4], 4294967040 }
 0x16c   :  { %208 = vsyncpa [#allocation3], 1 }
 0x16d   :  { %209 = vsyncpa [#allocation6], 1 }
 0x16e   :  { %210 = vsyncpa [#allocation4], 1 }

</bundles_post_ra>
